<compile_context>
chip_gen: v7x
topology: tpu7x:2x2x1
jax: 0.10.0
libtpu: 0.0.40
codegen_flags: <defaults>
</compile_context>

<pallas_src>
import functools

import jax
import jax.numpy as jnp
from jax import lax
from jax.experimental import pallas as pl
from jax.experimental.pallas import tpu as pltpu


def _round_up(x, m):
    return ((x + m - 1) // m) * m


def _voxel_accumulate_kernel(tile_tbl, chunk_tbl, active_tbl, first_tbl,
                             ptsT_ref, out_ref, *, ts, sub_k):
    """One grid step == one (slot-tile, point-chunk) pair of the compacted schedule.

    tile_tbl/chunk_tbl/active_tbl/first_tbl: (max_pairs,) int32 in SMEM.
      tile_tbl[p]  : slot tile this pair accumulates into (drives out index_map)
      chunk_tbl[p] : point chunk streamed for this pair (drives in index_map)
      active_tbl[p]: 1 -> accumulate, 0 -> schedule padding / empty-tile zeroing
      first_tbl[p] : 1 -> first pair of this tile -> zero the resident accumulator
    ptsT_ref: (8, tn) f32  rows 0..2 = x,y,z ; row 3 = 1.0 ; row 4 = slot id as an
              exact float (-1.0 for padded points) ; rows 5..7 = 0.
    out_ref : (8, ts) f32  resident accumulator [sum_x, sum_y, sum_z, count, ...].
    """
    p = pl.program_id(0)

    @pl.when(first_tbl[p] > 0)
    def _():
        out_ref[...] = jnp.zeros_like(out_ref)

    @pl.when(active_tbl[p] > 0)
    def _():
        tn = ptsT_ref.shape[1]
        num_sub = tn // sub_k
        base = (tile_tbl[p] * ts).astype(jnp.float32)
        # Slot value of every output lane, laid along sublanes (hoisted out of
        # the K loop; JAX does not CSE broadcasts).
        slot_vals = (lax.broadcasted_iota(jnp.int32, (ts, sub_k), 0)
                     .astype(jnp.float32) + base)

        def body(j, acc):
            start = pl.multiple_of(j * sub_k, sub_k)
            sub = ptsT_ref[:, pl.ds(start, sub_k)]              # (8, sub_k)
            ids = sub[4:5, :]                                    # (1, sub_k) exact float ids
            onehot_t = (slot_vals == ids).astype(jnp.float32)    # (ts, sub_k)
            # out += pts @ onehot^T : contract the point axis (dim 1 of both).
            return acc + lax.dot_general(
                sub, onehot_t, (((1,), (1,)), ((), ())),
                preferred_element_type=jnp.float32,
                precision=lax.Precision.HIGHEST)

        acc = lax.fori_loop(0, num_sub, body,
                            jnp.zeros((8, ts), jnp.float32), unroll=True)
        out_ref[...] += acc


@functools.partial(jax.jit,
                   static_argnames=("voxel_size", "grid_dim",
                                    "tile_slots", "tile_points"))
def grid_subsample(stacked_points, stacked_lengths, voxel_size, grid_dim,
                   tile_slots=512, tile_points=8192):
    """Pallas-backed grid subsampling.

    Returns:
      sub_points : (B * grid_dim**3, 3) float32, first sum(new_lengths) rows valid
      new_lengths: (B,) int32, number of occupied voxels per batch element
    """
    n = stacked_points.shape[0]
    b = stacked_lengths.shape[0]
    v = grid_dim ** 3
    s = b * v

    # ---- tile sizes (all static) -------------------------------------------
    # ts default 512 = multiple of 256 (whole MXU weight loads on v6e/v7x);
    # tn default 8192 amortizes the ~0.35us per-step cost; sub_k blocks the
    # one-hot so a (tn, ts) buffer never materializes in VMEM.
    ts = _round_up(min(tile_slots, s), 128)
    tn = _round_up(min(tile_points, n), 128)
    sub_k = 512 if tn % 512 == 0 else (256 if tn % 256 == 0 else 128)
    s_pad = _round_up(s, ts)
    n_pad = _round_up(n, tn)
    num_tiles = s_pad // ts
    num_chunks = n_pad // tn
    # Points are sorted by slot id, so each chunk spans a contiguous slot range;
    # the compacted schedule needs at most num_chunks + num_tiles - 1 pairs
    # (including one zero-only pair per empty tile).
    max_pairs = num_chunks + num_tiles

    pts = stacked_points.astype(jnp.float32)

    # ---- glue: per-point batch id and linear voxel / slot id ---------------
    offsets = jnp.cumsum(stacked_lengths)
    point_idx = jnp.arange(n, dtype=jnp.int32)
    batch_id = jnp.searchsorted(offsets, point_idx, side="right").astype(jnp.int32)

    vox_f = jnp.floor(pts / voxel_size).astype(jnp.int32)              # (N, 3)
    vox_min = jax.ops.segment_min(vox_f, batch_id, num_segments=b)     # per-cloud origin
    vox = jnp.clip(vox_f - vox_min[batch_id], 0, grid_dim - 1)
    voxel_id = (vox[:, 0] * grid_dim + vox[:, 1]) * grid_dim + vox[:, 2]
    slot_id = (batch_id * v + voxel_id).astype(jnp.int32)              # (N,)

    # ---- sort points by slot id: one key/val sort + one gather -------------
    slot_sorted, perm = lax.sort_key_val(slot_id, point_idx)
    pts_sorted = pts[perm]

    ids_pad = jnp.full((n_pad,), -1, dtype=jnp.int32).at[:n].set(slot_sorted)
    ptsT = jnp.zeros((8, n_pad), jnp.float32)
    ptsT = ptsT.at[:3, :n].set(pts_sorted.T)
    ptsT = ptsT.at[3, :n].set(1.0)
    ptsT = ptsT.at[4, :].set(ids_pad.astype(jnp.float32))   # exact float ids, -1.0 = pad

    # ---- compacted (tile, chunk) schedule (scalar-prefetched into SMEM) ----
    ids_chunks = ids_pad.reshape(num_chunks, tn)
    valid = ids_chunks >= 0
    cmin = jnp.min(jnp.where(valid, ids_chunks, jnp.int32(2 ** 30)), axis=1)
    cmax = jnp.max(jnp.where(valid, ids_chunks, jnp.int32(-1)), axis=1)
    has_pts = cmax >= 0
    lo = jnp.where(has_pts, cmin // ts, num_tiles)        # first tile touched by chunk
    hi = jnp.where(has_pts, cmax // ts, num_tiles - 1)    # last tile (empty range if pad-only)
    tiles = jnp.arange(num_tiles, dtype=jnp.int32)
    cstart = jnp.searchsorted(hi, tiles, side="left").astype(jnp.int32)
    cend = jnp.searchsorted(lo, tiles, side="right").astype(jnp.int32) - 1
    count = jnp.maximum(cend - cstart + 1, 0)             # active chunks per tile
    pairs_per_tile = jnp.maximum(count, 1)                # empty tile -> one zero-only pair
    off = jnp.concatenate([jnp.zeros((1,), jnp.int32),
                           jnp.cumsum(pairs_per_tile)[:-1].astype(jnp.int32)])
    total_pairs = off[-1] + pairs_per_tile[-1]

    p_idx = jnp.arange(max_pairs, dtype=jnp.int32)
    t_of_p = jnp.clip(jnp.searchsorted(off, p_idx, side="right") - 1,
                      0, num_tiles - 1).astype(jnp.int32)
    j_of_p = p_idx - off[t_of_p]
    cnt_p = count[t_of_p]
    chunk_of_p = jnp.clip(cstart[t_of_p] + jnp.minimum(j_of_p, jnp.maximum(cnt_p - 1, 0)),
                          0, num_chunks - 1).astype(jnp.int32)
    valid_p = p_idx < total_pairs
    tile_tbl = t_of_p
    chunk_tbl = chunk_of_p                                # tail pairs repeat last chunk -> no DMA
    active_tbl = (valid_p & (cnt_p > 0)).astype(jnp.int32)
    first_tbl = (valid_p & (j_of_p == 0)).astype(jnp.int32)

    # ---- Pallas kernel: per-slot [sum_xyz, count] via blocked one-hot matmul
    flops = 2 * 8 * tn * ts * max_pairs
    bytes_accessed = 8 * n_pad * 4 + 8 * s_pad * 4 + 4 * max_pairs * 4
    out = pl.pallas_call(
        functools.partial(_voxel_accumulate_kernel, ts=ts, sub_k=sub_k),
        out_shape=jax.ShapeDtypeStruct((8, s_pad), jnp.float32),
        grid_spec=pltpu.PrefetchScalarGridSpec(
            num_scalar_prefetch=4,
            grid=(max_pairs,),
            in_specs=[pl.BlockSpec((8, tn), lambda p, tt, ct, at, ft: (0, ct[p]))],
            out_specs=pl.BlockSpec((8, ts), lambda p, tt, ct, at, ft: (0, tt[p])),
        ),
        compiler_params=pltpu.CompilerParams(
            dimension_semantics=("arbitrary",),
            vmem_limit_bytes=32 * 1024 * 1024),
        cost_estimate=pl.CostEstimate(flops=int(flops), transcendentals=0,
                                      bytes_accessed=int(bytes_accessed)),
    )(tile_tbl, chunk_tbl, active_tbl, first_tbl, ptsT)

    # ---- glue: mean per occupied voxel, cumsum+scatter compaction ----------
    sums = out[:3, :s].T                       # (S, 3)
    counts = out[3, :s]                        # (S,)  (exact up to 2^24 points/voxel)
    means = sums / jnp.maximum(counts, 1.0)[:, None]
    occupied = counts > 0.0
    new_lengths = jnp.sum(occupied.reshape(b, v), axis=1).astype(jnp.int32)

    dest = jnp.cumsum(occupied.astype(jnp.int32)) - 1
    scatter_idx = jnp.where(occupied, dest, s)           # dump row for empty slots
    sub_points = jnp.zeros((s + 1, 3), jnp.float32).at[scatter_idx].set(means)[:s]
    return sub_points, new_lengths


if __name__ == "__main__":
    key = jax.random.PRNGKey(0)

    batch = 2
    n_points = 64
    voxel_size = 0.25
    grid_dim = 4  # coords drawn in [0, 1) -> at most 4 voxels per axis

    stacked_lengths = jnp.array([40, 24], dtype=jnp.int32)
    stacked_points = jax.random.uniform(key, (n_points, 3), dtype=jnp.float32)

    sub_points, new_lengths = grid_subsample(
        stacked_points, stacked_lengths, voxel_size, grid_dim)
    jax.block_until_ready((sub_points, new_lengths))

    total = int(jnp.sum(new_lengths))
    assert total <= n_points
    assert sub_points.shape == (batch * grid_dim ** 3, 3)
    valid = sub_points[:total]
    assert bool(jnp.all(valid >= jnp.min(stacked_points) - 1e-5))
    assert bool(jnp.all(valid <= jnp.max(stacked_points) + 1e-5))

    # ---- pure-JAX reference check of the voxel barycenters ----
    offs = jnp.cumsum(stacked_lengths)
    pidx = jnp.arange(n_points, dtype=jnp.int32)
    bid = jnp.searchsorted(offs, pidx, side="right").astype(jnp.int32)
    vf = jnp.floor(stacked_points / voxel_size).astype(jnp.int32)
    vmin = jax.ops.segment_min(vf, bid, num_segments=batch)
    vox = jnp.clip(vf - vmin[bid], 0, grid_dim - 1)
    vid = (vox[:, 0] * grid_dim + vox[:, 1]) * grid_dim + vox[:, 2]
    sid = bid * grid_dim ** 3 + vid
    s_total = batch * grid_dim ** 3
    ref_sums = jax.ops.segment_sum(stacked_points, sid, num_segments=s_total)
    ref_cnts = jax.ops.segment_sum(jnp.ones((n_points,), jnp.float32), sid,
                                   num_segments=s_total)
    occ = ref_cnts > 0
    ref_means = ref_sums / jnp.maximum(ref_cnts, 1.0)[:, None]
    ref_lengths = jnp.sum(occ.reshape(batch, -1), axis=1).astype(jnp.int32)
    occ_idx = jnp.nonzero(occ)[0]
    ref_valid = ref_means[occ_idx]

    assert bool(jnp.all(new_lengths == ref_lengths))
    assert bool(jnp.allclose(sub_points[:total], ref_valid, atol=1e-5, rtol=1e-5))
    assert bool(jnp.all(sub_points[total:] == 0.0))

    print("KERNEL_OK")
</pallas_src>

<mosaic_0001>
module attributes {stable_mosaic.version = 11 : i64} {
  func.func @_voxel_accumulate_kernel(%arg0: i32, %arg1: memref<2xi32, #tpu.memory_space<smem>>, %arg2: memref<2xi32, #tpu.memory_space<smem>>, %arg3: memref<2xi32, #tpu.memory_space<smem>>, %arg4: memref<2xi32, #tpu.memory_space<smem>>, %arg5: memref<8x128xf32, #tpu.memory_space<vmem>>, %arg6: memref<8x128xf32, #tpu.memory_space<vmem>>) attributes {dimension_semantics = [#tpu.dimension_semantics<arbitrary>], iteration_bounds = array<i64: 2>, scalar_prefetch = 4 : i64, scratch_operands = 0 : i64, tpu.core_type = #tpu.core_type<tc>, window_params = [{transform_indices = @transform_0, window_bounds = array<i64: 8, 128>}, {transform_indices = @transform_1, window_bounds = array<i64: 8, 128>}]} {
    %0 = arith.index_cast %arg0 : i32 to index
    %1 = memref.load %arg4[%0] : memref<2xi32, #tpu.memory_space<smem>>
    %c0_i32 = arith.constant 0 : i32
    %2 = arith.cmpi sgt, %1, %c0_i32 : i32
    %3 = arith.extui %2 : i1 to i32
    %c0_i32_0 = arith.constant 0 : i32
    %4 = arith.cmpi ne, %3, %c0_i32_0 : i32
    scf.if %4 {
      %cst = arith.constant 0.000000e+00 : f32
      %10 = vector.broadcast %cst : f32 to vector<8x128xf32>
      %c0 = arith.constant 0 : index
      %c0_3 = arith.constant 0 : index
      %11 = vector.load %arg6[%c0, %c0_3] : memref<8x128xf32, #tpu.memory_space<vmem>>, vector<8x128xf32>
      tpu.vector_store %arg6[%c0, %c0_3], %10 {strides = array<i32>} : memref<8x128xf32, #tpu.memory_space<vmem>>, vector<8x128xf32>,
    } else {
    }
    %5 = arith.index_cast %arg0 : i32 to index
    %6 = memref.load %arg3[%5] : memref<2xi32, #tpu.memory_space<smem>>
    %c0_i32_1 = arith.constant 0 : i32
    %7 = arith.cmpi sgt, %6, %c0_i32_1 : i32
    %8 = arith.extui %7 : i1 to i32
    %c0_i32_2 = arith.constant 0 : i32
    %9 = arith.cmpi ne, %8, %c0_i32_2 : i32
    scf.if %9 {
      %10 = arith.index_cast %arg0 : i32 to index
      %11 = memref.load %arg1[%10] : memref<2xi32, #tpu.memory_space<smem>>
      %c128_i32 = arith.constant 128 : i32
      %12 = arith.muli %11, %c128_i32 : i32
      %13 = arith.sitofp %12 : i32 to f32
      %14 = tpu.iota {dimensions = array<i32: 0>} : vector<128x128xi32>
      %15 = arith.sitofp %14 : vector<128x128xi32> to vector<128x128xf32>
      %16 = vector.broadcast %13 : f32 to vector<128x128xf32>
      %17 = arith.addf %15, %16 : vector<128x128xf32>
      %cst = arith.constant 0.000000e+00 : f32
      %18 = vector.broadcast %cst : f32 to vector<8x128xf32>
      %c0_i32_3 = arith.constant 0 : i32
      %c128_i32_4 = arith.constant 128 : i32
      %19 = arith.muli %c0_i32_3, %c128_i32_4 : i32
      %20 = tpu.assume_multiple %19, 128 : i32
      %c0 = arith.constant 0 : index
      %21 = arith.index_cast %20 : i32 to index
      %22 = vector.load %arg5[%c0, %21] : memref<8x128xf32, #tpu.memory_space<vmem>>, vector<8x128xf32>
      %23 = vector.extract_strided_slice %22 {offsets = [4, 0], sizes = [1, 128], strides = [1, 1]} : vector<8x128xf32> to vector<1x128xf32>
      %24 = vector.broadcast %23 : vector<1x128xf32> to vector<128x128xf32>
      %25 = arith.cmpf oeq, %17, %24 : vector<128x128xf32>
      %26 = arith.extui %25 : vector<128x128xi1> to vector<128x128xi32>
      %27 = arith.sitofp %26 : vector<128x128xi32> to vector<128x128xf32>
      %cst_5 = arith.constant dense<0.000000e+00> : vector<8x128xf32>
      %28 = tpu.matmul %22, %27, %cst_5 {dimension_numbers = #tpu.dot_dimension_numbers<[1], [1], [0], [0], [0, 0, 1, 0], [], []>, precision = #tpu.contract_precision<fp32>} : vector<8x128xf32>, vector<128x128xf32>, vector<8x128xf32> -> vector<8x128xf32>
      %29 = arith.addf %18, %28 : vector<8x128xf32>
      %c1_i32 = arith.constant 1 : i32
      %c0_6 = arith.constant 0 : index
      %c0_7 = arith.constant 0 : index
      %30 = vector.load %arg6[%c0_6, %c0_7] : memref<8x128xf32, #tpu.memory_space<vmem>>, vector<8x128xf32>
      %31 = arith.addf %30, %29 : vector<8x128xf32>
      %c0_8 = arith.constant 0 : index
      %c0_9 = arith.constant 0 : index
      %32 = vector.load %arg6[%c0_8, %c0_9] : memref<8x128xf32, #tpu.memory_space<vmem>>, vector<8x128xf32>
      tpu.vector_store %arg6[%c0_8, %c0_9], %31 {strides = array<i32>} : memref<8x128xf32, #tpu.memory_space<vmem>>, vector<8x128xf32>,
    } else {
    }
    return
  }
  func.func @transform_0(%arg0: i32, %arg1: memref<2xi32, #tpu.memory_space<smem>>, %arg2: memref<2xi32, #tpu.memory_space<smem>>, %arg3: memref<2xi32, #tpu.memory_space<smem>>, %arg4: memref<2xi32, #tpu.memory_space<smem>>) -> (i32, i32) {
    %0 = arith.index_cast %arg0 : i32 to index
    %1 = memref.load %arg2[%0] : memref<2xi32, #tpu.memory_space<smem>>
    %c0_i32 = arith.constant 0 : i32
    %c0_i32_0 = arith.constant 0 : i32
    return %c0_i32, %1 : i32, i32
  }
  func.func @transform_1(%arg0: i32, %arg1: memref<2xi32, #tpu.memory_space<smem>>, %arg2: memref<2xi32, #tpu.memory_space<smem>>, %arg3: memref<2xi32, #tpu.memory_space<smem>>, %arg4: memref<2xi32, #tpu.memory_space<smem>>) -> (i32, i32) {
    %0 = arith.index_cast %arg0 : i32 to index
    %1 = memref.load %arg1[%0] : memref<2xi32, #tpu.memory_space<smem>>
    %c0_i32 = arith.constant 0 : i32
    %c0_i32_0 = arith.constant 0 : i32
    return %c0_i32, %1 : i32, i32
  }
}

</mosaic_0001>

<bundles_post_ra>
// kernel: custom-call
= control target key start
LH: loop header
LB: loop body
LE: loop exit
PB: predicated region body
PF: predicated region fallthrough
CT: control target
= control target key end

     0   :  { %s6_s0 = inlined_call_operand.vmem [shape: u32[64], index: 0, kind: output, shape index: {}]  }

// kernel: grid_subsample.1
= control target key start
LH: loop header
LB: loop body
LE: loop exit
PB: predicated region body
PF: predicated region fallthrough
CT: control target
= control target key end

     0   :  { %s2092_s0 = inlined_call_operand.vmem [shape: s32[2], index: 0, kind: input, shape index: {}]   ;;  %s2093_s4 = inlined_call_operand.vmem [shape: f32[8,128], index: 4, kind: input, shape index: {}]   ;;  %s2094_s5 = inlined_call_operand.vmem [shape: f32[8,128], index: 5, kind: output, shape index: {}]   ;;  %s2095_s1 = inlined_call_operand.vmem [shape: s32[2], index: 1, kind: input, shape index: {}]   ;;  %s2096_s2 = inlined_call_operand.vmem [shape: s32[2], index: 2, kind: input, shape index: {}]   ;;  %s2097_s3 = inlined_call_operand.vmem [shape: s32[2], index: 3, kind: input, shape index: {}]  }
   0x1   :  { %s10_s20 = sshll.u32 %s2092_s0, 4  ;;  %s14_s23 = sshll.u32 %s2095_s1, 4  ;;  %s11_s20 = int_to_ptr.vmem [resolvable:$true] %s10_s20  ;;  %s15_s23 = int_to_ptr.vmem [resolvable:$true] %s14_s23 }
   0x2   :  { %s1512_s24 = scalar_lea.vmem %s11_s20, 16  ;;  %p1517_p1 = scmp.lt.s32.totalorder %s11_s20, %s11_s20 }
   0x3   :  { %p1513_p0 = scmp.ne.s32.totalorder %s11_s20, %s1512_s24  ;;  %p1518_p2 = scmp.lt.s32.totalorder %s1512_s24, %s1512_s24 }
   0x5   :  { %p1519_p3 = por %p1518_p2, %p1517_p1 }
   0x7   :  { %p1520_p4 = pnand %p1519_p3, %p1513_p0 }
   0x9   :  { %1523 = shalt.err (!%p1520_p4)  }
   0xa   :  { %s1570_s25 = smov [#allocation3]   ;;  %s1524_s26 = scalar_lea.vmem %s15_s23, 16 }
   0xb   :  { %13 = dma.vmem_to_smem %s11_s20, 16, %s1570_s25, [#allocation2] }
   0xc   :  { %p1525_p5 = scmp.ne.s32.totalorder %s15_s23, %s1524_s26  ;;  %p1529_p6 = scmp.lt.s32.totalorder %s15_s23, %s15_s23 }
   0xd   :  { %p1530_p7 = scmp.lt.s32.totalorder %s1524_s26, %s1524_s26 }
   0xf   :  { %p1531_p8 = por %p1530_p7, %p1529_p6 }
  0x11   :  { %p1532_p9 = pnand %p1531_p8, %p1525_p5 }
  0x13   :  { %1535 = shalt.err (!%p1532_p9)  }
  0x14   :  { %s1571_s0 = smov [#allocation4]   ;;  %s18_s28 = sshll.u32 %s2096_s2, 4  ;;  %s19_s28 = int_to_ptr.vmem [resolvable:$true] %s18_s28 }
  0x15   :  { %17 = dma.vmem_to_smem %s15_s23, 16, %s1571_s0, [#allocation2] }
  0x16   :  { %s22_s6 = sshll.u32 %s2097_s3, 4  ;;  %s1536_s7 = scalar_lea.vmem %s19_s28, 16  ;;  %s23_s6 = int_to_ptr.vmem [resolvable:$true] %s22_s6 }
  0x17   :  { %p1537_p10 = scmp.ne.s32.totalorder %s19_s28, %s1536_s7  ;;  %p1541_p11 = scmp.lt.s32.totalorder %s19_s28, %s19_s28 }
  0x18   :  { %p1542_p12 = scmp.lt.s32.totalorder %s1536_s7, %s1536_s7 }
  0x1a   :  { %p1543_p13 = por %p1542_p12, %p1541_p11 }
  0x1c   :  { %p1544_p0 = pnand %p1543_p13, %p1537_p10 }
  0x1e   :  { %1547 = shalt.err (!%p1544_p0)  }
  0x1f   :  { %s1572_s8 = smov [#allocation5]   ;;  %s1548_s9 = scalar_lea.vmem %s23_s6, 16 }
  0x20   :  { %21 = dma.vmem_to_smem %s19_s28, 16, %s1572_s8, [#allocation2] }
  0x21   :  { %p1549_p1 = scmp.ne.s32.totalorder %s23_s6, %s1548_s9  ;;  %p1553_p2 = scmp.lt.s32.totalorder %s23_s6, %s23_s6 }
  0x22   :  { %p1554_p3 = scmp.lt.s32.totalorder %s1548_s9, %s1548_s9 }
  0x24   :  { %p1555_p4 = por %p1554_p3, %p1553_p2 }
  0x26   :  { %p1556_p5 = pnand %p1555_p4, %p1549_p1 }
  0x28   :  { %1559 = shalt.err (!%p1556_p5)  }
  0x29   :  { %s1573_s2 = smov [#allocation6]  }
  0x2a   :  { %25 = dma.vmem_to_smem %s23_s6, 16, %s1573_s2, [#allocation2] }
  0x2b   :  { %1564 = dma.done.wait [#allocation2], 64 }
  0x2c   :  { %1565 = vsyncadd [#allocation2], 4294967232 }
  0x2d   :  { %27 = sfence }
  0x2e   :  { %s1621_s3 = smov 0  }
  0x2f LB: > { %s963_s10 = sadd.s32 4294967295, %s1568_s3   ;;  %p967_p6 = scmp.ge.s32.totalorder %s1568_s3, 1  ;;  %s1568_s3 = sphi %s1621_s3, %s33_s3  }
  0x30   : > { %p114_p7 = scmp.lt.s32.totalorder %s1568_s3, 3 }
  0x32   : > { %p115_p8 = pnand %p967_p6, %p114_p7 }
  0x33   : > { %s134_s11 = sld [smem:[#allocation4 + %s963_s10]] (!%p115_p8) }
  0x34   : > { %118 = sbr.rel (%p115_p8) target bundleno = 508 (0x1fc), region = 24  ;;  %s140_s12 = sld [smem:[#allocation3 + %s963_s10]] (!%p115_p8) }
  0x35   : > { %s146_s13 = sld [smem:[#allocation6 + %s963_s10]] (!%p115_p8) }
  0x39   : > { %p135_p9 = scmp.lt.s32.totalorder (!%p115_p8), %s134_s11, 0 }
  0x3a   : > { %p141_p10 = scmp.lt.s32.totalorder (!%p115_p8), %s140_s12, 0 }
  0x3b   : > { %s2115_s11 = smov (!%p135_p9, %s134_s11), 0  ;;  %p970_p11 = scmp.le.s32.totalorder %s146_s13, 0 }
  0x3c   : > { %s2117_s12 = smov (!%p141_p10, %s140_s12), 0  ;;  %s968_s14 = sshll.u32 %s2115_s11, 3  ;;  %v1574_v0 = vmov (!%p970_p11), 0.0  }
  0x3d   : > { %s138_s17 = scalar_lea.vmem %s2093_s4, %s968_s14  ;;  %s969_s18 = sshll.u32 %s2117_s12, 3 }
  0x3e   : > { %s1635_s21 = scalar_lea.vmem %s2094_s5, %s969_s18  ;;  %150 = sbr.rel (%p970_p11) target bundleno = 69 (0x45), region = 28 }
  0x3f   : > { %151 = vst [vmem:[%s1635_s21] sm:$0xff] (!%p970_p11), %v1574_v0 }
  0x45 PF: > { %s152_s22 = sld [smem:[#allocation5 + %s963_s10]] }
  0x4b   : > { %p971_p12 = scmp.le.s32.totalorder %s152_s22, 0 }
  0x4c   : > { %s157_s23 = sld [smem:[#allocation3 + %s963_s10]] (!%p971_p12)  ;;  %v160_v1 = vlaneseq (!%p971_p12)  ;;  %v1575_v2 = vmov (!%p971_p12), 0.0|0.0   ;;  %vm1576_vm0 = vmmov (!%p971_p12), 0   ;;  %v1577_v4 = vmov (!%p971_p12), 0.0   ;;  %v1649_v8 = vld [vmem:[%s138_s17] sm:$0xff] (!%p971_p12) }
  0x4d   : > { %156 = sbr.rel (%p971_p12) target bundleno = 508 (0x1fc), region = 32  ;;  %1351 = vmatprep.subr.bf16.mxu0 (!%p971_p12), %v1575_v2  ;;  %1375 = vmatprep.subr.bf16.mxu1 (!%p971_p12), %v1575_v2  ;;  %v1578_v35 = vmov (!%p971_p12), 1.0|1.0  }
  0x4e   : > { %v1640_v3 = vshrl.u32 (!%p971_p12), %v160_v1, 7  ;;  %1173 = vmatprep.mubr.msk.f32.mxu0 (!%p971_p12), %vm1576_vm0, %v1577_v4  ;;  %1208 = vmatprep.mubr.msk.f32.mxu1 (!%p971_p12), %vm1576_vm0, %v1577_v4 }
  0x50   : > { %v162_v5 = vadd.s32 (!%p971_p12), 8, %v1640_v3  ;;  %v213_v6 = vsub.s32 (!%p971_p12), 4, %v1640_v3  ;;  %v163_v7 = vadd.s32 (!%p971_p12), 16, %v1640_v3  ;;  %v164_v9 = vadd.s32 (!%p971_p12), 24, %v1640_v3 }
  0x51   : > { %v165_v10 = vadd.s32 (!%p971_p12), 32, %v1640_v3  ;;  %v166_v11 = vadd.s32 (!%p971_p12), 40, %v1640_v3  ;;  %v177_v12 = vcvt.s32.f32 (!%p971_p12), %v1640_v3  ;;  %v167_v15 = vadd.s32 (!%p971_p12), 48, %v1640_v3 }
  0x52   : > { %s972_s24 = sshll.u32 (!%p971_p12), %s157_s23, 7  ;;  %v178_v13 = vcvt.s32.f32 (!%p971_p12), %v162_v5  ;;  %v179_v14 = vcvt.s32.f32 (!%p971_p12), %v163_v7  ;;  %v180_v16 = vcvt.s32.f32 (!%p971_p12), %v164_v9  ;;  %v168_v19 = vadd.s32 (!%p971_p12), 56, %v1640_v3 }
  0x53   : > { %s159_s25 = scvt.s32.f32 (!%p971_p12), %s972_s24  ;;  %v181_v17 = vcvt.s32.f32 (!%p971_p12), %v165_v10  ;;  %v182_v18 = vcvt.s32.f32 (!%p971_p12), %v166_v11  ;;  %v1658_v20 = vrot.slane (!%p971_p12), %v1649_v8, %v213_v6  ;;  %v183_v28 = vcvt.s32.f32 (!%p971_p12), %v167_v15 }
  0x54   : > { %v184_v29 = vcvt.s32.f32 %v168_v19  ;;  %v169_v48 = vadd.s32 64, %v1640_v3  ;;  %v170_v49 = vadd.s32 72, %v1640_v3  ;;  %v171_v5 = vadd.s32 80, %v1640_v3 }
  0x55   : > { %v1660_v21 = vstv %s159_s25  ;;  %v172_v6 = vadd.s32 88, %v1640_v3 }
  0x56   : > { %v194_v22 = vadd.f32 %v1660_v21, %v177_v12  ;;  %v195_v23 = vadd.f32 %v1660_v21, %v178_v13  ;;  %v196_v24 = vadd.f32 %v1660_v21, %v179_v14  ;;  %v197_v25 = vadd.f32 %v1660_v21, %v180_v16 }
  0x57   : > { %v198_v26 = vadd.f32 %v1660_v21, %v181_v17  ;;  %v199_v27 = vadd.f32 %v1660_v21, %v182_v18  ;;  %v1699_v40 = vadd.f32 %v1660_v21, %v183_v28  ;;  %v1702_v41 = vadd.f32 %v1660_v21, %v184_v29 }
  0x58   : > { %vm215_vm1 = vcmp.eq.f32.partialorder %v194_v22, %v1658_v20  ;;  %vm216_vm2 = vcmp.eq.f32.partialorder %v195_v23, %v1658_v20  ;;  %vm217_vm3 = vcmp.eq.f32.partialorder %v196_v24, %v1658_v20  ;;  %vm218_vm4 = vcmp.eq.f32.partialorder %v197_v25, %v1658_v20 }
  0x59   : > { %v973_v30 = vsel %vm215_vm1, 1.0, %v1577_v4  ;;  %v974_v31 = vsel %vm216_vm2, 1.0, %v1577_v4  ;;  %vm1674_vm5 = vmpackc.low %vm216_vm2, %vm215_vm1  ;;  %v975_v33 = vsel %vm217_vm3, 1.0, %v1577_v4  ;;  %v976_v34 = vsel %vm218_vm4, 1.0, %v1577_v4 }
  0x5a   : > { %1353 = vmatpush3.bf16.xpose.msk.msra.mxu0 %vm1674_vm5, %v1578_v35  ;;  %v1687_v36 = vsub.f32 %v973_v30, %v973_v30  ;;  %v1689_v37 = vsub.f32 %v974_v31, %v974_v31  ;;  %v1691_v38 = vsub.f32 %v975_v33, %v975_v33  ;;  %v1693_v39 = vsub.f32 %v976_v34, %v976_v34  ;;  %vm1726_vm8 = vmpackc.low %vm218_vm4, %vm217_vm3 }
  0x5b   : > { %1354 = vmatprep.subr.bf16.mxu0 %v1575_v2  ;;  %vm219_vm6 = vcmp.eq.f32.partialorder %v198_v26, %v1658_v20  ;;  %vm220_vm7 = vcmp.eq.f32.partialorder %v199_v27, %v1658_v20  ;;  %vm221_vm9 = vcmp.eq.f32.partialorder %v1699_v40, %v1658_v20  ;;  %vm222_vm10 = vcmp.eq.f32.partialorder %v1702_v41, %v1658_v20 }
  0x5c   : > { %v357_v42 = vand.u32 4294901760, %v1687_v36  ;;  %v364_v43 = vand.u32 4294901760, %v1689_v37  ;;  %v977_v44 = vsel %vm219_vm6, 1.0, %v1577_v4  ;;  %v978_v45 = vsel %vm220_vm7, 1.0, %v1577_v4  ;;  %vm1771_vm11 = vmpackc.low %vm220_vm7, %vm219_vm6 }
  0x5d   : > { %v371_v46 = vand.u32 4294901760, %v1691_v38  ;;  %v378_v47 = vand.u32 4294901760, %v1693_v39  ;;  %v1730_v53 = vsub.f32 %v977_v44, %v977_v44  ;;  %v1732_v54 = vsub.f32 %v978_v45, %v978_v45  ;;  %vm1812_vm14 = vmpackc.low %vm222_vm10, %vm221_vm9 }
  0x5e   : > { %v358_v50 = vsub.f32 %v1687_v36, %v357_v42  ;;  %v365_v51 = vsub.f32 %v1689_v37, %v364_v43  ;;  %v185_v59 = vcvt.s32.f32 %v169_v48  ;;  %v186_v60 = vcvt.s32.f32 %v170_v49 }
  0x5f   : > { %v372_v57 = vsub.f32 %v1691_v38, %v371_v46  ;;  %v379_v58 = vsub.f32 %v1693_v39, %v378_v47  ;;  %v979_v62 = vsel %vm221_vm9, 1.0, %v1577_v4  ;;  %v980_v63 = vsel %vm222_vm10, 1.0, %v1577_v4 }
  0x60   : > { %v359_v55 = vand.u32 4294901760, %v358_v50  ;;  %v366_v56 = vand.u32 4294901760, %v365_v51  ;;  %v385_v0 = vand.u32 4294901760, %v1730_v53  ;;  %v392_v1 = vand.u32 4294901760, %v1732_v54 }
  0x61   : > { %v373_v7 = vand.u32 4294901760, %v372_v57  ;;  %v380_v9 = vand.u32 4294901760, %v379_v58  ;;  %v202_v10 = vadd.f32 %v1660_v21, %v185_v59  ;;  %v203_v11 = vadd.f32 %v1660_v21, %v186_v60 }
  0x62   : > { %1356 = vmatpush3.bf16.xpose.msk.msra.mxu0 %vm1726_vm8, %v1578_v35  ;;  %v1376_v61 = vpack.c.bf16 %v366_v56, %v359_v55  ;;  %v1763_v12 = vsub.f32 %v979_v62, %v979_v62  ;;  %v1765_v13 = vsub.f32 %v980_v63, %v980_v63  ;;  %v386_v15 = vsub.f32 %v1730_v53, %v385_v0 }
  0x63   : > { %1357 = vmatprep.subr.bf16.mxu0 %v1575_v2  ;;  %v393_v16 = vsub.f32 %v1732_v54, %v392_v1  ;;  %v187_v17 = vcvt.s32.f32 %v171_v5  ;;  %v1379_v18 = vpack.c.bf16 %v380_v9, %v373_v7  ;;  %vm223_vm12 = vcmp.eq.f32.partialorder %v202_v10, %v1658_v20 }
  0x64   : > { %1377 = vmatpush3.bf16.xpose.msra.mxu1 %v1376_v61  ;;  %vm224_vm13 = vcmp.eq.f32.partialorder %v203_v11, %v1658_v20  ;;  %v188_v19 = vcvt.s32.f32 %v172_v6  ;;  %v399_v22 = vand.u32 4294901760, %v1763_v12  ;;  %v406_v23 = vand.u32 4294901760, %v1765_v13 }
  0x65   : > { %1378 = vmatprep.subr.bf16.mxu1 %v1575_v2  ;;  %v173_v24 = vadd.s32 96, %v1640_v3  ;;  %v981_v25 = vsel %vm223_vm12, 1.0, %v1577_v4  ;;  %v982_v26 = vsel %vm224_vm13, 1.0, %v1577_v4  ;;  %v204_v27 = vadd.f32 %v1660_v21, %v187_v17  ;;  %vm1845_vm2 = vmpackc.low %vm224_vm13, %vm223_vm12 }
  0x66   : > { %v174_v28 = vadd.s32 104, %v1640_v3  ;;  %v387_v29 = vand.u32 4294901760, %v386_v15  ;;  %v394_v30 = vand.u32 4294901760, %v393_v16  ;;  %v205_v31 = vadd.f32 %v1660_v21, %v188_v19 }
  0x67   : > { %v400_v33 = vsub.f32 %v1763_v12, %v399_v22  ;;  %v407_v34 = vsub.f32 %v1765_v13, %v406_v23  ;;  %v1802_v44 = vsub.f32 %v981_v25, %v981_v25  ;;  %v1804_v45 = vsub.f32 %v982_v26, %v982_v26 }
  0x68   : > { %vm225_vm15 = vcmp.eq.f32.partialorder %v204_v27, %v1658_v20  ;;  %v189_v49 = vcvt.s32.f32 %v173_v24  ;;  %v190_v50 = vcvt.s32.f32 %v174_v28  ;;  %v1382_v51 = vpack.c.bf16 %v394_v30, %v387_v29 }
  0x69   : > { %vm226_vm1 = vcmp.eq.f32.partialorder %v205_v31, %v1658_v20  ;;  %v401_v55 = vand.u32 4294901760, %v400_v33  ;;  %v408_v56 = vand.u32 4294901760, %v407_v34  ;;  %v983_v40 = vsel %vm225_vm15, 1.0, %v1577_v4 }
  0x6a   : > { %1359 = vmatpush3.bf16.xpose.msk.msra.mxu0 %vm1771_vm11, %v1578_v35  ;;  %v413_v41 = vand.u32 4294901760, %v1802_v44  ;;  %v420_v57 = vand.u32 4294901760, %v1804_v45  ;;  %v175_v58 = vadd.s32 112, %v1640_v3  ;;  %v984_v59 = vsel %vm226_vm1, 1.0, %v1577_v4  ;;  %vm1898_vm6 = vmpackc.low %vm226_vm1, %vm225_vm15 }
  0x6b   : > { %1360 = vmatprep.subr.bf16.mxu0 %v1575_v2  ;;  %v206_v60 = vadd.f32 %v1660_v21, %v189_v49  ;;  %v207_v61 = vadd.f32 %v1660_v21, %v190_v50  ;;  %v176_v62 = vadd.s32 120, %v1640_v3  ;;  %v1385_v63 = vpack.c.bf16 %v408_v56, %v401_v55 }
  0x6c   : > { %1380 = vmatpush3.bf16.xpose.msra.mxu1 %v1379_v18  ;;  %v1835_v5 = vsub.f32 %v983_v40, %v983_v40  ;;  %v1837_v6 = vsub.f32 %v984_v59, %v984_v59  ;;  %v414_v7 = vsub.f32 %v1802_v44, %v413_v41  ;;  %v421_v9 = vsub.f32 %v1804_v45, %v420_v57 }
  0x6d   : > { %1381 = vmatprep.subr.bf16.mxu1 %v1575_v2  ;;  %vm227_vm3 = vcmp.eq.f32.partialorder %v206_v60, %v1658_v20  ;;  %vm228_vm4 = vcmp.eq.f32.partialorder %v207_v61, %v1658_v20  ;;  %v191_v3 = vcvt.s32.f32 %v175_v58  ;;  %v192_v16 = vcvt.s32.f32 %v176_v62 }
  0x6e   : > { %v1855_v17 = vpack.c.bf16 %v364_v43, %v357_v42  ;;  %v1861_v10 = vpack.c.bf16 %v378_v47, %v371_v46  ;;  %v1867_v11 = vpack.c.bf16 %v392_v1, %v385_v0  ;;  %v1869_v18 = vpack.c.bf16 %v406_v23, %v399_v22  ;;  %vm1932_vm10 = vmpackc.low %vm228_vm4, %vm227_vm3 }
  0x6f   : > { %v1871_v19 = vpack.c.bf16 %v420_v57, %v413_v41  ;;  %v427_v42 = vand.u32 4294901760, %v1835_v5  ;;  %v434_v43 = vand.u32 4294901760, %v1837_v6  ;;  %v415_v46 = vand.u32 4294901760, %v414_v7 }
  0x70   : > { %v422_v47 = vand.u32 4294901760, %v421_v9  ;;  %v985_v0 = vsel %vm227_vm3, 1.0, %v1577_v4  ;;  %v986_v1 = vsel %vm228_vm4, 1.0, %v1577_v4  ;;  %v208_v22 = vadd.f32 %v1660_v21, %v191_v3 }
  0x71   : > { %v209_v23 = vadd.f32 %v1660_v21, %v192_v16  ;;  %v1887_v24 = vpack.c.bf16 %v434_v43, %v427_v42  ;;  %v1890_v25 = vsub.f32 %v985_v0, %v985_v0  ;;  %v1892_v26 = vsub.f32 %v986_v1, %v986_v1 }
  0x72   : > { %1362 = vmatpush3.bf16.xpose.msk.msra.mxu0 %vm1812_vm14, %v1578_v35  ;;  %v1388_v29 = vpack.c.bf16 %v422_v47, %v415_v46  ;;  %v428_v30 = vsub.f32 %v1835_v5, %v427_v42  ;;  %v435_v21 = vsub.f32 %v1837_v6, %v434_v43  ;;  %vm229_vm7 = vcmp.eq.f32.partialorder %v208_v22, %v1658_v20 }
  0x73   : > { %1363 = vmatprep.subr.bf16.mxu0 %v1575_v2  ;;  %vm230_vm9 = vcmp.eq.f32.partialorder %v209_v23, %v1658_v20  ;;  %v441_v27 = vand.u32 4294901760, %v1890_v25  ;;  %v448_v31 = vand.u32 4294901760, %v1892_v26  ;;  %v987_v33 = vsel %vm229_vm7, 1.0, %v1577_v4 }
  0x74   : > { %1383 = vmatpush3.bf16.xpose.msra.mxu1 %v1382_v51  ;;  %v988_v34 = vsel %vm230_vm9, 1.0, %v1577_v4  ;;  %v429_v49 = vand.u32 4294901760, %v428_v30  ;;  %v436_v50 = vand.u32 4294901760, %v435_v21  ;;  %v1922_v55 = vand.u32 4294901760, %v1649_v8  ;;  %vm1956_vm12 = vmpackc.low %vm230_vm9, %vm229_vm7 }
  0x75   : > { %1384 = vmatprep.subr.bf16.mxu1 %v1575_v2  ;;  %v1918_v51 = vpack.c.bf16 %v448_v31, %v441_v27  ;;  %v1924_v56 = vsub.f32 %v987_v33, %v987_v33  ;;  %v1926_v40 = vsub.f32 %v988_v34, %v988_v34  ;;  %v442_v58 = vsub.f32 %v1890_v25, %v441_v27 }
  0x76   : > { %v1391_v57 = vpack.c.bf16 %v436_v50, %v429_v49  ;;  %v449_v59 = vsub.f32 %v1892_v26, %v448_v31  ;;  %v1940_v62 = vsub.f32 %v1649_v8, %v1922_v55  ;;  %v1400_v1 = vpack.c.bf16 %v1689_v37, %v1687_v36 }
  0x77   : > { %v455_v60 = vand.u32 4294901760, %v1924_v56  ;;  %v462_v61 = vand.u32 4294901760, %v1926_v40  ;;  %v1403_v23 = vpack.c.bf16 %v1693_v39, %v1691_v38  ;;  %v1406_v36 = vpack.c.bf16 %v1732_v54, %v1730_v53 }
  0x78   : > { %v450_v7 = vand.u32 4294901760, %v449_v59  ;;  %v346_v8 = vand.u32 4294901760, %v1940_v62  ;;  %v1409_v37 = vpack.c.bf16 %v1765_v13, %v1763_v12  ;;  %v1412_v38 = vpack.c.bf16 %v1804_v45, %v1802_v44 }
  0x79   : > { %v1948_v9 = vpack.c.bf16 %v462_v61, %v455_v60  ;;  %v456_v42 = vsub.f32 %v1924_v56, %v455_v60  ;;  %v463_v43 = vsub.f32 %v1926_v40, %v462_v61  ;;  %v1415_v39 = vpack.c.bf16 %v1837_v6, %v1835_v5 }
  0x7a   : > { %1365 = vmatpush3.bf16.xpose.msk.msra.mxu0 %vm1845_vm2, %v1578_v35  ;;  %v347_v46 = vsub.f32 %v1940_v62, %v346_v8  ;;  %v1418_v53 = vpack.c.bf16 %v1892_v26, %v1890_v25  ;;  %v1421_v54 = vpack.c.bf16 %v1926_v40, %v1924_v56 }
  0x7b   : > { %1366 = vmatprep.subr.bf16.mxu0 %v1575_v2  ;;  %v457_v20 = vand.u32 4294901760, %v456_v42  ;;  %v464_v47 = vand.u32 4294901760, %v463_v43 }
  0x7c   : > { %1386 = vmatpush3.bf16.xpose.msra.mxu1 %v1385_v63  ;;  %v443_v63 = vand.u32 4294901760, %v442_v58  ;;  %v348_v0 = vand.u32 4294901760, %v347_v46 }
  0x7d   : > { %1387 = vmatprep.subr.bf16.mxu1 %v1575_v2  ;;  %v1397_v22 = vpack.c.bf16 %v464_v47, %v457_v20 }
  0x7e   : > { %v1394_v16 = vpack.c.bf16 %v450_v7, %v443_v63 }
  0x82   : > { %1368 = vmatpush3.bf16.xpose.msk.msra.mxu0 %vm1898_vm6, %v1578_v35 }
  0x83   : > { %1369 = vmatprep.subr.bf16.mxu0 %v1575_v2 }
  0x84   : > { %1389 = vmatpush3.bf16.xpose.msra.mxu1 %v1388_v29 }
  0x85   : > { %1390 = vmatprep.subr.bf16.mxu1 %v1575_v2 }
  0x8a   : > { %1371 = vmatpush3.bf16.xpose.msk.msra.mxu0 %vm1932_vm10, %v1578_v35 }
  0x8b   : > { %1372 = vmatprep.subr.bf16.mxu0 %v1575_v2 }
  0x8c   : > { %1392 = vmatpush3.bf16.xpose.msra.mxu1 %v1391_v57 }
  0x8d   : > { %1393 = vmatprep.subr.bf16.mxu1 %v1575_v2 }
  0x92   : > { %1374 = vmatpush3.bf16.xpose.msk.msra.mxu0 %vm1956_vm12, %v1578_v35 }
  0x93   : > { %1399 = vmatprep.subr.bf16.mxu0 %v1575_v2 }
  0x94   : > { %1395 = vmatpush3.bf16.xpose.msra.mxu1 %v1394_v16 }
  0x95   : > { %1396 = vmatprep.subr.bf16.mxu1 %v1575_v2 }
  0x99   : > { %1174 = vmatmul.mubr.f32.vlgmr.msra.gmra.mrb[0].mxu0 %v348_v0 }
  0x9a   : > { %1401 = vmatpush3.bf16.xpose.msra.mxu0 %v1400_v1  ;;  %1243 = vmatprep.mubr.msk.f32.mxu0 %vm1576_vm0, %v1577_v4 }
  0x9b   : > { %1402 = vmatprep.subr.bf16.mxu0 %v1575_v2 }
  0x9c   : > { %1398 = vmatpush3.bf16.xpose.msra.mxu1 %v1397_v22 }
  0x9d   : > { %1423 = vmatprep.subr.bf16.mxu1 %v1575_v2 }
  0xa2   : > { %1404 = vmatpush3.bf16.xpose.msra.mxu0 %v1403_v23 }
  0xa3   : > { %1209 = vmatmul.mubr.f32.vlgmr.msra.gmra.mrb[0].mxu1 %v1922_v55  ;;  %1405 = vmatprep.subr.bf16.mxu0 %v1575_v2 }
  0xa4   : > { %1425 = vmatpush3.bf16.xpose.msk.msra.mxu1 %vm1674_vm5, %v1578_v35  ;;  %1278 = vmatprep.mubr.msk.f32.mxu1 %vm1576_vm0, %v1577_v4 }
  0xa5   : > { %1426 = vmatprep.subr.bf16.mxu1 %v1575_v2 }
  0xaa   : > { %1407 = vmatpush3.bf16.xpose.msra.mxu0 %v1406_v36 }
  0xab   : > { %1408 = vmatprep.subr.bf16.mxu0 %v1575_v2 }
  0xac   : > { %1428 = vmatpush3.bf16.xpose.msk.msra.mxu1 %vm1726_vm8, %v1578_v35 }
  0xad   : > { %1429 = vmatprep.subr.bf16.mxu1 %v1575_v2 }
  0xb2   : > { %1410 = vmatpush3.bf16.xpose.msra.mxu0 %v1409_v37 }
  0xb3   : > { %1411 = vmatprep.subr.bf16.mxu0 %v1575_v2 }
  0xb4   : > { %1431 = vmatpush3.bf16.xpose.msk.msra.mxu1 %vm1771_vm11, %v1578_v35 }
  0xb5   : > { %1432 = vmatprep.subr.bf16.mxu1 %v1575_v2 }
  0xba   : > { %1413 = vmatpush3.bf16.xpose.msra.mxu0 %v1412_v38 }
  0xbb   : > { %1414 = vmatprep.subr.bf16.mxu0 %v1575_v2 }
  0xbc   : > { %1434 = vmatpush3.bf16.xpose.msk.msra.mxu1 %vm1812_vm14, %v1578_v35 }
  0xbd   : > { %1435 = vmatprep.subr.bf16.mxu1 %v1575_v2 }
  0xc2   : > { %1416 = vmatpush3.bf16.xpose.msra.mxu0 %v1415_v39 }
  0xc3   : > { %1417 = vmatprep.subr.bf16.mxu0 %v1575_v2 }
  0xc4   : > { %1437 = vmatpush3.bf16.xpose.msk.msra.mxu1 %vm1845_vm2, %v1578_v35 }
  0xc5   : > { %1438 = vmatprep.subr.bf16.mxu1 %v1575_v2 }
  0xca   : > { %1419 = vmatpush3.bf16.xpose.msra.mxu0 %v1418_v53 }
  0xcb   : > { %1420 = vmatprep.subr.bf16.mxu0 %v1575_v2 }
  0xcc   : > { %1440 = vmatpush3.bf16.xpose.msk.msra.mxu1 %vm1898_vm6, %v1578_v35 }
  0xcd   : > { %1441 = vmatprep.subr.bf16.mxu1 %v1575_v2 }
  0xd2   : > { %1422 = vmatpush3.bf16.xpose.msra.mxu0 %v1421_v54 }
  0xd3   : > { %1447 = vmatprep.subr.bf16.mxu0 %v1575_v2 }
  0xd4   : > { %1443 = vmatpush3.bf16.xpose.msk.msra.mxu1 %vm1932_vm10, %v1578_v35 }
  0xd5   : > { %1444 = vmatprep.subr.bf16.mxu1 %v1575_v2 }
  0xd9   : > { %1244 = vmatmul.mubr.f32.vlgmr.msra.gmra.mrb[2].mxu0 %v1940_v62 }
  0xda   : > { %1449 = vmatpush3.bf16.xpose.msra.mxu0 %v1855_v17  ;;  %1313 = vmatprep.mubr.msk.f32.mxu0 %vm1576_vm0, %v1577_v4 }
  0xdb   : > { %1450 = vmatprep.subr.bf16.mxu0 %v1575_v2 }
  0xdc   : > { %1446 = vmatpush3.bf16.xpose.msk.msra.mxu1 %vm1956_vm12, %v1578_v35 }
  0xdd   : > { %1471 = vmatprep.subr.bf16.mxu1 %v1575_v2 }
  0xe2   : > { %1452 = vmatpush3.bf16.xpose.msra.mxu0 %v1861_v10 }
  0xe3   : > { %1279 = vmatmul.mubr.f32.vlgmr.msra.gmra.mrb[2].mxu1 %v346_v8  ;;  %1453 = vmatprep.subr.bf16.mxu0 %v1575_v2 }
  0xe4   : > { %1473 = vmatpush3.bf16.xpose.msk.msra.mxu1 %vm1674_vm5, %v1578_v35  ;;  %1348 = vmatprep.mubr.msk.f32.mxu1 %vm1576_vm0, %v1577_v4 }
  0xe5   : > { %1474 = vmatprep.subr.bf16.mxu1 %v1575_v2 }
  0xea   : > { %1455 = vmatpush3.bf16.xpose.msra.mxu0 %v1867_v11 }
  0xeb   : > { %1456 = vmatprep.subr.bf16.mxu0 %v1575_v2 }
  0xec   : > { %1476 = vmatpush3.bf16.xpose.msk.msra.mxu1 %vm1726_vm8, %v1578_v35 }
  0xed   : > { %1477 = vmatprep.subr.bf16.mxu1 %v1575_v2 }
  0xf2   : > { %1458 = vmatpush3.bf16.xpose.msra.mxu0 %v1869_v18 }
  0xf3   : > { %1459 = vmatprep.subr.bf16.mxu0 %v1575_v2 }
  0xf4   : > { %1479 = vmatpush3.bf16.xpose.msk.msra.mxu1 %vm1771_vm11, %v1578_v35 }
  0xf5   : > { %1480 = vmatprep.subr.bf16.mxu1 %v1575_v2 }
  0xfa   : > { %1461 = vmatpush3.bf16.xpose.msra.mxu0 %v1871_v19 }
  0xfb   : > { %1462 = vmatprep.subr.bf16.mxu0 %v1575_v2 }
  0xfc   : > { %1482 = vmatpush3.bf16.xpose.msk.msra.mxu1 %vm1812_vm14, %v1578_v35 }
  0xfd   : > { %1483 = vmatprep.subr.bf16.mxu1 %v1575_v2 }
 0x102   : > { %1464 = vmatpush3.bf16.xpose.msra.mxu0 %v1887_v24 }
 0x103   : > { %1465 = vmatprep.subr.bf16.mxu0 %v1575_v2 }
 0x104   : > { %1485 = vmatpush3.bf16.xpose.msk.msra.mxu1 %vm1845_vm2, %v1578_v35 }
 0x105   : > { %1486 = vmatprep.subr.bf16.mxu1 %v1575_v2 }
 0x10a   : > { %1467 = vmatpush3.bf16.xpose.msra.mxu0 %v1918_v51 }
 0x10b   : > { %1468 = vmatprep.subr.bf16.mxu0 %v1575_v2 }
 0x10c   : > { %1488 = vmatpush3.bf16.xpose.msk.msra.mxu1 %vm1898_vm6, %v1578_v35 }
 0x10d   : > { %1489 = vmatprep.subr.bf16.mxu1 %v1575_v2 }
 0x112   : > { %1470 = vmatpush3.bf16.xpose.msra.mxu0 %v1948_v9 }
 0x114   : > { %1491 = vmatpush3.bf16.xpose.msk.msra.mxu1 %vm1932_vm10, %v1578_v35 }
 0x115   : > { %1492 = vmatprep.subr.bf16.mxu1 %v1575_v2 }
 0x119   : > { %1314 = vmatmul.mubr.f32.vlgmr.msra.gmra.mrb[4].mxu0 %v1922_v55 }
 0x11c   : > { %1494 = vmatpush3.bf16.xpose.msk.msra.mxu1 %vm1956_vm12, %v1578_v35  ;;  %v904_v35 = vld [vmem:[%s1635_s21] sm:$0xff] }
 0x123   : > { %1349 = vmatmul.mubr.f32.vlgmr.msra.gmra.mrb[4].mxu1 %v1922_v55 }
 0x16c   : > { %v350_v4 = vpop.f32.mrb[0].mxu0 }
 0x16d   : > { %v1175_v32 = vpop.f32.mrb[1].mxu0 }
 0x176   : > { %v501_v52 = vpop.f32.mrb[0].mxu1 }
 0x177   : > { %v502_v12 = vadd.f32 %v501_v52, %v350_v4  ;;  %v1210_v13 = vpop.f32.mrb[1].mxu1 }
 0x1ac   : > { %v605_v14 = vpop.f32.mrb[2].mxu0 }
 0x1ad   : > { %v606_v44 = vadd.f32 %v605_v14, %v502_v12  ;;  %v1245_v45 = vpop.f32.mrb[3].mxu0 }
 0x1b6   : > { %v694_v48 = vpop.f32.mrb[2].mxu1 }
 0x1b7   : > { %v695_v2 = vadd.f32 %v694_v48, %v606_v44  ;;  %v1280_v5 = vpop.f32.mrb[3].mxu1 }
 0x1ec   : > { %v813_v6 = vpop.f32.mrb[4].mxu0 }
 0x1ed   : > { %v814_v15 = vadd.f32 %v813_v6, %v695_v2  ;;  %v1315_v17 = vpop.f32.mrb[5].mxu0 }
 0x1f6   : > { %v900_v10 = vpop.f32.mrb[4].mxu1 }
 0x1f7   : > { %v901_v11 = vadd.f32 %v900_v10, %v814_v15  ;;  %v1350_v18 = vpop.f32.mrb[5].mxu1 }
 0x1f9   : > { %v905_v19 = vadd.f32 %v904_v35, %v901_v11 }
 0x1fb   : > { %906 = vst [vmem:[%s1635_s21] sm:$0xff] %v905_v19 }
 0x1fc PF: > { %s33_s3 = sadd.s32 1, %s1568_s3  }
 0x1fd   : > { %p30_p13 = scmp.ge.s32.totalorder %s33_s3, 4  }
 0x1ff   :  { %32 = sbr.rel (!%p30_p13) target bundleno = 47 (0x2f), region = 62 }

</bundles_post_ra>
